<compile_context>
chip_gen: v7x
topology: tpu7x:2x2x1
jax: 0.10.0
libtpu: 0.0.40
codegen_flags: <defaults>
</compile_context>

<pallas_src>
import math

import jax
import jax.numpy as jnp
from jax import lax
from jax.experimental import pallas as pl
from jax.experimental.pallas import tpu as pltpu


# ----------------------------- configuration --------------------------------
NUM_HEADS = 4
EMBED_DIM = 32
HEAD_DIM = EMBED_DIM // NUM_HEADS
BATCH = 2
SEQ_LEN = 8


# ------------------------------- kernel -------------------------------------
def mha_kernel(x_ref, wqkv_ref, bqkv_ref, wo_ref, bo_ref, o_ref):
    """One grid step processes a (Bc, L, E) slab of the batch.

    x_ref    : (Bc, L, E)   input slab
    wqkv_ref : (E, 3E)      fused, pre-transposed Q|K|V weights (y = x @ W_t + b)
    bqkv_ref : (1, 3E)      fused Q|K|V biases
    wo_ref   : (E, E)       pre-transposed output-projection weight
    bo_ref   : (1, E)       output-projection bias
    o_ref    : (Bc, L, E)   output slab
    """
    bc, L, E = x_ref.shape
    scale = 1.0 / math.sqrt(HEAD_DIM)

    # Fold the batch slab into the M (sublane) dimension for the projections.
    if bc == 1:
        x2d = x_ref[0]                                   # (L, E)
    else:
        x2d = x_ref[...].reshape(bc * L, E)              # (Bc*L, E)

    # --- fused Q/K/V projection: one MXU push, one bias add ---
    qkv = jnp.dot(x2d, wqkv_ref[...],
                  preferred_element_type=jnp.float32) + bqkv_ref[...]   # (M, 3E)
    q = qkv[:, :E] * scale                # fold 1/sqrt(HD) into q once for all heads
    k = qkv[:, E:2 * E]
    v = qkv[:, 2 * E:3 * E]

    wo = wo_ref[...]                      # (E, E); row (sublane) slices are cheap
    bo = bo_ref[...]                      # (1, E)

    # --- per-batch / per-head scaled dot-product attention (static loops) ---
    for b in range(bc):
        r0 = b * L
        qb = q[r0:r0 + L]                 # (L, E)   sublane slice
        kb = k[r0:r0 + L]
        vb = v[r0:r0 + L]

        acc = jnp.zeros((L, E), jnp.float32)
        for h in range(NUM_HEADS):
            c0 = h * HEAD_DIM
            qh = qb[:, c0:c0 + HEAD_DIM]  # (L, HD)
            kh = kb[:, c0:c0 + HEAD_DIM]  # (L, HD)
            vh = vb[:, c0:c0 + HEAD_DIM]  # (L, HD)

            # scores: contract last dim of q and k directly (no explicit k.T)
            s = lax.dot_general(qh, kh, (((1,), (1,)), ((), ())),
                                preferred_element_type=jnp.float32)     # (L, L)

            # numerically stable softmax; reciprocal goes to the EUP slot
            s_max = jnp.max(s, axis=-1, keepdims=True)
            p = jnp.exp(s - s_max)
            inv = pl.reciprocal(jnp.sum(p, axis=-1, keepdims=True), approx=True)
            p = p * inv

            ctx_h = jnp.dot(p, vh, preferred_element_type=jnp.float32)  # (L, HD)
            # Fold the head into the output projection: no lane-axis concat.
            acc = acc + jnp.dot(ctx_h, wo[c0:c0 + HEAD_DIM, :],
                                preferred_element_type=jnp.float32)     # (L, E)

        o_ref[b] = (acc + bo).astype(o_ref.dtype)


# ------------------------------ wrapper --------------------------------------
def multi_head_attention(x, params):
    """x: (B, L, E) float32.  params: dict of PyTorch-convention Linear weights."""
    B, L, E = x.shape

    # PyTorch Linear computes y = x @ W.T + b with W of shape (out, in).
    # Pre-transpose and fuse Q|K|V (glue, done once) so the kernel does a
    # single wide matmul.
    w_qkv = jnp.concatenate(
        [params["proj_q_w"].T, params["proj_k_w"].T, params["proj_v_w"].T],
        axis=1)                                               # (E, 3E)
    b_qkv = jnp.concatenate(
        [params["proj_q_b"], params["proj_k_b"], params["proj_v_b"]]
    ).reshape(1, 3 * E)                                       # (1, 3E)
    wo = params["out_projection_w"].T                         # (E, E)
    bo = params["out_projection_b"].reshape(1, E)             # (1, E)

    # Single grid step on single-TensorCore chips (v5e/v6e); 2-way parallel
    # batch split on v7x (2 TensorCores per chip).
    try:
        kind = jax.devices()[0].device_kind.lower()
    except Exception:
        kind = ""
    two_tc = "v7" in kind
    num_steps = 2 if (two_tc and B >= 2 and B % 2 == 0) else 1
    bc = B // num_steps

    return pl.pallas_call(
        mha_kernel,
        out_shape=jax.ShapeDtypeStruct((B, L, E), x.dtype),
        grid_spec=pltpu.PrefetchScalarGridSpec(
            num_scalar_prefetch=0,
            grid=(num_steps,),
            in_specs=[
                pl.BlockSpec((bc, L, E), lambda i: (i, 0, 0)),     # x slab
                pl.BlockSpec((E, 3 * E), lambda i: (0, 0)),        # fused W_qkv
                pl.BlockSpec((1, 3 * E), lambda i: (0, 0)),        # fused b_qkv
                pl.BlockSpec((E, E), lambda i: (0, 0)),            # W_o
                pl.BlockSpec((1, E), lambda i: (0, 0)),            # b_o
            ],
            out_specs=pl.BlockSpec((bc, L, E), lambda i: (i, 0, 0)),
        ),
        compiler_params=pltpu.CompilerParams(
            dimension_semantics=("parallel",)),
    )(x, w_qkv, b_qkv, wo, bo)


# --------------------------- pure-JAX reference -------------------------------
def mha_reference(x, params):
    B, L, E = x.shape

    def linear(name, inp):
        return inp @ params[f"{name}_w"].T + params[f"{name}_b"]

    q = linear("proj_q", x).reshape(B, L, NUM_HEADS, HEAD_DIM).transpose(0, 2, 1, 3)
    k = linear("proj_k", x).reshape(B, L, NUM_HEADS, HEAD_DIM).transpose(0, 2, 1, 3)
    v = linear("proj_v", x).reshape(B, L, NUM_HEADS, HEAD_DIM).transpose(0, 2, 1, 3)

    qk = jnp.einsum("bhsd,bhed->bhse", q, k) / jnp.sqrt(jnp.float32(HEAD_DIM))
    attn = jax.nn.softmax(qk, axis=-1)
    ctx = jnp.einsum("bhse,bhed->bhsd", attn, v)
    ctx = ctx.transpose(0, 2, 1, 3).reshape(B, L, E)
    return linear("out_projection", ctx)


# --------------------------------- main ---------------------------------------
if __name__ == "__main__":
    key = jax.random.PRNGKey(0)
    keys = jax.random.split(key, 16)

    # Deterministic synthetic parameters (PyTorch Linear shapes: (out, in)).
    bound = 1.0 / math.sqrt(EMBED_DIM)
    params = {}
    names = ["proj_q", "proj_k", "proj_v", "out_projection"]
    for i, name in enumerate(names):
        params[f"{name}_w"] = jax.random.uniform(
            keys[2 * i], (EMBED_DIM, EMBED_DIM), jnp.float32, -bound, bound)
        params[f"{name}_b"] = jax.random.uniform(
            keys[2 * i + 1], (EMBED_DIM,), jnp.float32, -bound, bound)

    x = jax.random.normal(keys[-1], (BATCH, SEQ_LEN, EMBED_DIM), jnp.float32)

    out = multi_head_attention(x, params)
    out = jax.block_until_ready(out)

    ref = mha_reference(x, params)
    assert out.shape == (BATCH, SEQ_LEN, EMBED_DIM)
    # Tolerance accounts for the approximate (EUP) reciprocal in the softmax
    # normalization; everything else is exact f32.
    assert jnp.allclose(out, ref, atol=2e-3, rtol=2e-3), "mismatch vs reference"

    print("KERNEL_OK")
</pallas_src>

<mosaic_0001>
module attributes {stable_mosaic.version = 11 : i64} {
  func.func @mha_kernel(%arg0: i32, %arg1: memref<2x8x32xf32, #tpu.memory_space<vmem>>, %arg2: memref<32x96xf32, #tpu.memory_space<vmem>>, %arg3: memref<1x96xf32, #tpu.memory_space<vmem>>, %arg4: memref<32x32xf32, #tpu.memory_space<vmem>>, %arg5: memref<1x32xf32, #tpu.memory_space<vmem>>, %arg6: memref<2x8x32xf32, #tpu.memory_space<vmem>>) attributes {dimension_semantics = [#tpu.dimension_semantics<parallel>], iteration_bounds = array<i64: 1>, scalar_prefetch = 0 : i64, scratch_operands = 0 : i64, tpu.core_type = #tpu.core_type<tc>, window_params = [{transform_indices = @transform_0, window_bounds = array<i64: 2, 8, 32>}, {pipeline_mode = #tpu.pipeline_mode<synchronous>, transform_indices = @transform_1, window_bounds = array<i64: 32, 96>}, {pipeline_mode = #tpu.pipeline_mode<synchronous>, transform_indices = @transform_2, window_bounds = array<i64: 1, 96>}, {pipeline_mode = #tpu.pipeline_mode<synchronous>, transform_indices = @transform_3, window_bounds = array<i64: 32, 32>}, {pipeline_mode = #tpu.pipeline_mode<synchronous>, transform_indices = @transform_4, window_bounds = array<i64: 1, 32>}, {transform_indices = @transform_5, window_bounds = array<i64: 2, 8, 32>}]} {
    %c0 = arith.constant 0 : index
    %c0_0 = arith.constant 0 : index
    %c0_1 = arith.constant 0 : index
    %0 = vector.load %arg1[%c0, %c0_0, %c0_1] : memref<2x8x32xf32, #tpu.memory_space<vmem>>, vector<2x8x32xf32>
    %1 = vector.shape_cast %0 : vector<2x8x32xf32> to vector<16x32xf32>
    %c0_2 = arith.constant 0 : index
    %c0_3 = arith.constant 0 : index
    %2 = vector.load %arg2[%c0_2, %c0_3] : memref<32x96xf32, #tpu.memory_space<vmem>>, vector<32x96xf32>
    %cst = arith.constant dense<0.000000e+00> : vector<16x96xf32>
    %3 = tpu.matmul %1, %2, %cst {dimension_numbers = #tpu.dot_dimension_numbers<[1], [0], [0], [1], [0, 0, 1, 1], [], []>} : vector<16x32xf32>, vector<32x96xf32>, vector<16x96xf32> -> vector<16x96xf32>
    %c0_4 = arith.constant 0 : index
    %c0_5 = arith.constant 0 : index
    %4 = vector.load %arg3[%c0_4, %c0_5] : memref<1x96xf32, #tpu.memory_space<vmem>>, vector<1x96xf32>
    %5 = vector.broadcast %4 : vector<1x96xf32> to vector<16x96xf32>
    %6 = arith.addf %3, %5 : vector<16x96xf32>
    %7 = vector.extract_strided_slice %6 {offsets = [0, 0], sizes = [16, 32], strides = [1, 1]} : vector<16x96xf32> to vector<16x32xf32>
    %cst_6 = arith.constant 0.353553385 : f32
    %8 = vector.broadcast %cst_6 : f32 to vector<16x32xf32>
    %9 = arith.mulf %7, %8 : vector<16x32xf32>
    %10 = vector.extract_strided_slice %6 {offsets = [0, 32], sizes = [16, 32], strides = [1, 1]} : vector<16x96xf32> to vector<16x32xf32>
    %11 = vector.extract_strided_slice %6 {offsets = [0, 64], sizes = [16, 32], strides = [1, 1]} : vector<16x96xf32> to vector<16x32xf32>
    %c0_7 = arith.constant 0 : index
    %c0_8 = arith.constant 0 : index
    %12 = vector.load %arg4[%c0_7, %c0_8] : memref<32x32xf32, #tpu.memory_space<vmem>>, vector<32x32xf32>
    %c0_9 = arith.constant 0 : index
    %c0_10 = arith.constant 0 : index
    %13 = vector.load %arg5[%c0_9, %c0_10] : memref<1x32xf32, #tpu.memory_space<vmem>>, vector<1x32xf32>
    %14 = vector.extract_strided_slice %9 {offsets = [0, 0], sizes = [8, 32], strides = [1, 1]} : vector<16x32xf32> to vector<8x32xf32>
    %15 = vector.extract_strided_slice %10 {offsets = [0, 0], sizes = [8, 32], strides = [1, 1]} : vector<16x32xf32> to vector<8x32xf32>
    %16 = vector.extract_strided_slice %11 {offsets = [0, 0], sizes = [8, 32], strides = [1, 1]} : vector<16x32xf32> to vector<8x32xf32>
    %cst_11 = arith.constant 0.000000e+00 : f32
    %17 = vector.broadcast %cst_11 : f32 to vector<8x32xf32>
    %18 = vector.extract_strided_slice %14 {offsets = [0, 0], sizes = [8, 8], strides = [1, 1]} : vector<8x32xf32> to vector<8x8xf32>
    %19 = vector.extract_strided_slice %15 {offsets = [0, 0], sizes = [8, 8], strides = [1, 1]} : vector<8x32xf32> to vector<8x8xf32>
    %20 = vector.extract_strided_slice %16 {offsets = [0, 0], sizes = [8, 8], strides = [1, 1]} : vector<8x32xf32> to vector<8x8xf32>
    %cst_12 = arith.constant dense<0.000000e+00> : vector<8x8xf32>
    %21 = tpu.matmul %18, %19, %cst_12 {dimension_numbers = #tpu.dot_dimension_numbers<[1], [1], [0], [0], [0, 0, 1, 0], [], []>} : vector<8x8xf32>, vector<8x8xf32>, vector<8x8xf32> -> vector<8x8xf32>
    %cst_13 = arith.constant dense<0xFF800000> : vector<8xf32>
    %22 = vector.multi_reduction <maximumf>, %21, %cst_13 [1] : vector<8x8xf32> to vector<8xf32>
    %23 = vector.shape_cast %22 : vector<8xf32> to vector<8x1xf32>
    %24 = vector.broadcast %23 : vector<8x1xf32> to vector<8x8xf32>
    %25 = arith.subf %21, %24 : vector<8x8xf32>
    %26 = math.exp %25 : vector<8x8xf32>
    %cst_14 = arith.constant dense<0.000000e+00> : vector<8xf32>
    %27 = vector.multi_reduction <add>, %26, %cst_14 [1] : vector<8x8xf32> to vector<8xf32>
    %28 = vector.shape_cast %27 : vector<8xf32> to vector<8x1xf32>
    %29 = tpu.reciprocal %28 {approx = true} : vector<8x1xf32> -> vector<8x1xf32>
    %30 = vector.broadcast %29 : vector<8x1xf32> to vector<8x8xf32>
    %31 = arith.mulf %26, %30 : vector<8x8xf32>
    %cst_15 = arith.constant dense<0.000000e+00> : vector<8x8xf32>
    %32 = tpu.matmul %31, %20, %cst_15 {dimension_numbers = #tpu.dot_dimension_numbers<[1], [0], [0], [1], [0, 0, 1, 1], [], []>} : vector<8x8xf32>, vector<8x8xf32>, vector<8x8xf32> -> vector<8x8xf32>
    %33 = vector.extract_strided_slice %12 {offsets = [0, 0], sizes = [8, 32], strides = [1, 1]} : vector<32x32xf32> to vector<8x32xf32>
    %cst_16 = arith.constant dense<0.000000e+00> : vector<8x32xf32>
    %34 = tpu.matmul %32, %33, %cst_16 {dimension_numbers = #tpu.dot_dimension_numbers<[1], [0], [0], [1], [0, 0, 1, 1], [], []>} : vector<8x8xf32>, vector<8x32xf32>, vector<8x32xf32> -> vector<8x32xf32>
    %35 = arith.addf %17, %34 : vector<8x32xf32>
    %36 = vector.extract_strided_slice %14 {offsets = [0, 8], sizes = [8, 8], strides = [1, 1]} : vector<8x32xf32> to vector<8x8xf32>
    %37 = vector.extract_strided_slice %15 {offsets = [0, 8], sizes = [8, 8], strides = [1, 1]} : vector<8x32xf32> to vector<8x8xf32>
    %38 = vector.extract_strided_slice %16 {offsets = [0, 8], sizes = [8, 8], strides = [1, 1]} : vector<8x32xf32> to vector<8x8xf32>
    %cst_17 = arith.constant dense<0.000000e+00> : vector<8x8xf32>
    %39 = tpu.matmul %36, %37, %cst_17 {dimension_numbers = #tpu.dot_dimension_numbers<[1], [1], [0], [0], [0, 0, 1, 0], [], []>} : vector<8x8xf32>, vector<8x8xf32>, vector<8x8xf32> -> vector<8x8xf32>
    %cst_18 = arith.constant dense<0xFF800000> : vector<8xf32>
    %40 = vector.multi_reduction <maximumf>, %39, %cst_18 [1] : vector<8x8xf32> to vector<8xf32>
    %41 = vector.shape_cast %40 : vector<8xf32> to vector<8x1xf32>
    %42 = vector.broadcast %41 : vector<8x1xf32> to vector<8x8xf32>
    %43 = arith.subf %39, %42 : vector<8x8xf32>
    %44 = math.exp %43 : vector<8x8xf32>
    %cst_19 = arith.constant dense<0.000000e+00> : vector<8xf32>
    %45 = vector.multi_reduction <add>, %44, %cst_19 [1] : vector<8x8xf32> to vector<8xf32>
    %46 = vector.shape_cast %45 : vector<8xf32> to vector<8x1xf32>
    %47 = tpu.reciprocal %46 {approx = true} : vector<8x1xf32> -> vector<8x1xf32>
    %48 = vector.broadcast %47 : vector<8x1xf32> to vector<8x8xf32>
    %49 = arith.mulf %44, %48 : vector<8x8xf32>
    %cst_20 = arith.constant dense<0.000000e+00> : vector<8x8xf32>
    %50 = tpu.matmul %49, %38, %cst_20 {dimension_numbers = #tpu.dot_dimension_numbers<[1], [0], [0], [1], [0, 0, 1, 1], [], []>} : vector<8x8xf32>, vector<8x8xf32>, vector<8x8xf32> -> vector<8x8xf32>
    %51 = vector.extract_strided_slice %12 {offsets = [8, 0], sizes = [8, 32], strides = [1, 1]} : vector<32x32xf32> to vector<8x32xf32>
    %cst_21 = arith.constant dense<0.000000e+00> : vector<8x32xf32>
    %52 = tpu.matmul %50, %51, %cst_21 {dimension_numbers = #tpu.dot_dimension_numbers<[1], [0], [0], [1], [0, 0, 1, 1], [], []>} : vector<8x8xf32>, vector<8x32xf32>, vector<8x32xf32> -> vector<8x32xf32>
    %53 = arith.addf %35, %52 : vector<8x32xf32>
    %54 = vector.extract_strided_slice %14 {offsets = [0, 16], sizes = [8, 8], strides = [1, 1]} : vector<8x32xf32> to vector<8x8xf32>
    %55 = vector.extract_strided_slice %15 {offsets = [0, 16], sizes = [8, 8], strides = [1, 1]} : vector<8x32xf32> to vector<8x8xf32>
    %56 = vector.extract_strided_slice %16 {offsets = [0, 16], sizes = [8, 8], strides = [1, 1]} : vector<8x32xf32> to vector<8x8xf32>
    %cst_22 = arith.constant dense<0.000000e+00> : vector<8x8xf32>
    %57 = tpu.matmul %54, %55, %cst_22 {dimension_numbers = #tpu.dot_dimension_numbers<[1], [1], [0], [0], [0, 0, 1, 0], [], []>} : vector<8x8xf32>, vector<8x8xf32>, vector<8x8xf32> -> vector<8x8xf32>
    %cst_23 = arith.constant dense<0xFF800000> : vector<8xf32>
    %58 = vector.multi_reduction <maximumf>, %57, %cst_23 [1] : vector<8x8xf32> to vector<8xf32>
    %59 = vector.shape_cast %58 : vector<8xf32> to vector<8x1xf32>
    %60 = vector.broadcast %59 : vector<8x1xf32> to vector<8x8xf32>
    %61 = arith.subf %57, %60 : vector<8x8xf32>
    %62 = math.exp %61 : vector<8x8xf32>
    %cst_24 = arith.constant dense<0.000000e+00> : vector<8xf32>
    %63 = vector.multi_reduction <add>, %62, %cst_24 [1] : vector<8x8xf32> to vector<8xf32>
    %64 = vector.shape_cast %63 : vector<8xf32> to vector<8x1xf32>
    %65 = tpu.reciprocal %64 {approx = true} : vector<8x1xf32> -> vector<8x1xf32>
    %66 = vector.broadcast %65 : vector<8x1xf32> to vector<8x8xf32>
    %67 = arith.mulf %62, %66 : vector<8x8xf32>
    %cst_25 = arith.constant dense<0.000000e+00> : vector<8x8xf32>
    %68 = tpu.matmul %67, %56, %cst_25 {dimension_numbers = #tpu.dot_dimension_numbers<[1], [0], [0], [1], [0, 0, 1, 1], [], []>} : vector<8x8xf32>, vector<8x8xf32>, vector<8x8xf32> -> vector<8x8xf32>
    %69 = vector.extract_strided_slice %12 {offsets = [16, 0], sizes = [8, 32], strides = [1, 1]} : vector<32x32xf32> to vector<8x32xf32>
    %cst_26 = arith.constant dense<0.000000e+00> : vector<8x32xf32>
    %70 = tpu.matmul %68, %69, %cst_26 {dimension_numbers = #tpu.dot_dimension_numbers<[1], [0], [0], [1], [0, 0, 1, 1], [], []>} : vector<8x8xf32>, vector<8x32xf32>, vector<8x32xf32> -> vector<8x32xf32>
    %71 = arith.addf %53, %70 : vector<8x32xf32>
    %72 = vector.extract_strided_slice %14 {offsets = [0, 24], sizes = [8, 8], strides = [1, 1]} : vector<8x32xf32> to vector<8x8xf32>
    %73 = vector.extract_strided_slice %15 {offsets = [0, 24], sizes = [8, 8], strides = [1, 1]} : vector<8x32xf32> to vector<8x8xf32>
    %74 = vector.extract_strided_slice %16 {offsets = [0, 24], sizes = [8, 8], strides = [1, 1]} : vector<8x32xf32> to vector<8x8xf32>
    %cst_27 = arith.constant dense<0.000000e+00> : vector<8x8xf32>
    %75 = tpu.matmul %72, %73, %cst_27 {dimension_numbers = #tpu.dot_dimension_numbers<[1], [1], [0], [0], [0, 0, 1, 0], [], []>} : vector<8x8xf32>, vector<8x8xf32>, vector<8x8xf32> -> vector<8x8xf32>
    %cst_28 = arith.constant dense<0xFF800000> : vector<8xf32>
    %76 = vector.multi_reduction <maximumf>, %75, %cst_28 [1] : vector<8x8xf32> to vector<8xf32>
    %77 = vector.shape_cast %76 : vector<8xf32> to vector<8x1xf32>
    %78 = vector.broadcast %77 : vector<8x1xf32> to vector<8x8xf32>
    %79 = arith.subf %75, %78 : vector<8x8xf32>
    %80 = math.exp %79 : vector<8x8xf32>
    %cst_29 = arith.constant dense<0.000000e+00> : vector<8xf32>
    %81 = vector.multi_reduction <add>, %80, %cst_29 [1] : vector<8x8xf32> to vector<8xf32>
    %82 = vector.shape_cast %81 : vector<8xf32> to vector<8x1xf32>
    %83 = tpu.reciprocal %82 {approx = true} : vector<8x1xf32> -> vector<8x1xf32>
    %84 = vector.broadcast %83 : vector<8x1xf32> to vector<8x8xf32>
    %85 = arith.mulf %80, %84 : vector<8x8xf32>
    %cst_30 = arith.constant dense<0.000000e+00> : vector<8x8xf32>
    %86 = tpu.matmul %85, %74, %cst_30 {dimension_numbers = #tpu.dot_dimension_numbers<[1], [0], [0], [1], [0, 0, 1, 1], [], []>} : vector<8x8xf32>, vector<8x8xf32>, vector<8x8xf32> -> vector<8x8xf32>
    %87 = vector.extract_strided_slice %12 {offsets = [24, 0], sizes = [8, 32], strides = [1, 1]} : vector<32x32xf32> to vector<8x32xf32>
    %cst_31 = arith.constant dense<0.000000e+00> : vector<8x32xf32>
    %88 = tpu.matmul %86, %87, %cst_31 {dimension_numbers = #tpu.dot_dimension_numbers<[1], [0], [0], [1], [0, 0, 1, 1], [], []>} : vector<8x8xf32>, vector<8x32xf32>, vector<8x32xf32> -> vector<8x32xf32>
    %89 = arith.addf %71, %88 : vector<8x32xf32>
    %90 = vector.broadcast %13 : vector<1x32xf32> to vector<8x32xf32>
    %91 = arith.addf %89, %90 : vector<8x32xf32>
    %c0_32 = arith.constant 0 : index
    %c0_33 = arith.constant 0 : index
    %c0_34 = arith.constant 0 : index
    %92 = vector.load %arg6[%c0_32, %c0_33, %c0_34] : memref<2x8x32xf32, #tpu.memory_space<vmem>>, vector<1x8x32xf32>
    %93 = vector.shape_cast %92 : vector<1x8x32xf32> to vector<8x32xf32>
    %94 = vector.shape_cast %91 : vector<8x32xf32> to vector<1x8x32xf32>
    tpu.vector_store %arg6[%c0_32, %c0_33, %c0_34], %94 {strides = array<i32>} : memref<2x8x32xf32, #tpu.memory_space<vmem>>, vector<1x8x32xf32>,
    %95 = vector.extract_strided_slice %9 {offsets = [8, 0], sizes = [8, 32], strides = [1, 1]} : vector<16x32xf32> to vector<8x32xf32>
    %96 = vector.extract_strided_slice %10 {offsets = [8, 0], sizes = [8, 32], strides = [1, 1]} : vector<16x32xf32> to vector<8x32xf32>
    %97 = vector.extract_strided_slice %11 {offsets = [8, 0], sizes = [8, 32], strides = [1, 1]} : vector<16x32xf32> to vector<8x32xf32>
    %cst_35 = arith.constant 0.000000e+00 : f32
    %98 = vector.broadcast %cst_35 : f32 to vector<8x32xf32>
    %99 = vector.extract_strided_slice %95 {offsets = [0, 0], sizes = [8, 8], strides = [1, 1]} : vector<8x32xf32> to vector<8x8xf32>
    %100 = vector.extract_strided_slice %96 {offsets = [0, 0], sizes = [8, 8], strides = [1, 1]} : vector<8x32xf32> to vector<8x8xf32>
    %101 = vector.extract_strided_slice %97 {offsets = [0, 0], sizes = [8, 8], strides = [1, 1]} : vector<8x32xf32> to vector<8x8xf32>
    %cst_36 = arith.constant dense<0.000000e+00> : vector<8x8xf32>
    %102 = tpu.matmul %99, %100, %cst_36 {dimension_numbers = #tpu.dot_dimension_numbers<[1], [1], [0], [0], [0, 0, 1, 0], [], []>} : vector<8x8xf32>, vector<8x8xf32>, vector<8x8xf32> -> vector<8x8xf32>
    %cst_37 = arith.constant dense<0xFF800000> : vector<8xf32>
    %103 = vector.multi_reduction <maximumf>, %102, %cst_37 [1] : vector<8x8xf32> to vector<8xf32>
    %104 = vector.shape_cast %103 : vector<8xf32> to vector<8x1xf32>
    %105 = vector.broadcast %104 : vector<8x1xf32> to vector<8x8xf32>
    %106 = arith.subf %102, %105 : vector<8x8xf32>
    %107 = math.exp %106 : vector<8x8xf32>
    %cst_38 = arith.constant dense<0.000000e+00> : vector<8xf32>
    %108 = vector.multi_reduction <add>, %107, %cst_38 [1] : vector<8x8xf32> to vector<8xf32>
    %109 = vector.shape_cast %108 : vector<8xf32> to vector<8x1xf32>
    %110 = tpu.reciprocal %109 {approx = true} : vector<8x1xf32> -> vector<8x1xf32>
    %111 = vector.broadcast %110 : vector<8x1xf32> to vector<8x8xf32>
    %112 = arith.mulf %107, %111 : vector<8x8xf32>
    %cst_39 = arith.constant dense<0.000000e+00> : vector<8x8xf32>
    %113 = tpu.matmul %112, %101, %cst_39 {dimension_numbers = #tpu.dot_dimension_numbers<[1], [0], [0], [1], [0, 0, 1, 1], [], []>} : vector<8x8xf32>, vector<8x8xf32>, vector<8x8xf32> -> vector<8x8xf32>
    %114 = vector.extract_strided_slice %12 {offsets = [0, 0], sizes = [8, 32], strides = [1, 1]} : vector<32x32xf32> to vector<8x32xf32>
    %cst_40 = arith.constant dense<0.000000e+00> : vector<8x32xf32>
    %115 = tpu.matmul %113, %114, %cst_40 {dimension_numbers = #tpu.dot_dimension_numbers<[1], [0], [0], [1], [0, 0, 1, 1], [], []>} : vector<8x8xf32>, vector<8x32xf32>, vector<8x32xf32> -> vector<8x32xf32>
    %116 = arith.addf %98, %115 : vector<8x32xf32>
    %117 = vector.extract_strided_slice %95 {offsets = [0, 8], sizes = [8, 8], strides = [1, 1]} : vector<8x32xf32> to vector<8x8xf32>
    %118 = vector.extract_strided_slice %96 {offsets = [0, 8], sizes = [8, 8], strides = [1, 1]} : vector<8x32xf32> to vector<8x8xf32>
    %119 = vector.extract_strided_slice %97 {offsets = [0, 8], sizes = [8, 8], strides = [1, 1]} : vector<8x32xf32> to vector<8x8xf32>
    %cst_41 = arith.constant dense<0.000000e+00> : vector<8x8xf32>
    %120 = tpu.matmul %117, %118, %cst_41 {dimension_numbers = #tpu.dot_dimension_numbers<[1], [1], [0], [0], [0, 0, 1, 0], [], []>} : vector<8x8xf32>, vector<8x8xf32>, vector<8x8xf32> -> vector<8x8xf32>
    %cst_42 = arith.constant dense<0xFF800000> : vector<8xf32>
    %121 = vector.multi_reduction <maximumf>, %120, %cst_42 [1] : vector<8x8xf32> to vector<8xf32>
    %122 = vector.shape_cast %121 : vector<8xf32> to vector<8x1xf32>
    %123 = vector.broadcast %122 : vector<8x1xf32> to vector<8x8xf32>
    %124 = arith.subf %120, %123 : vector<8x8xf32>
    %125 = math.exp %124 : vector<8x8xf32>
    %cst_43 = arith.constant dense<0.000000e+00> : vector<8xf32>
    %126 = vector.multi_reduction <add>, %125, %cst_43 [1] : vector<8x8xf32> to vector<8xf32>
    %127 = vector.shape_cast %126 : vector<8xf32> to vector<8x1xf32>
    %128 = tpu.reciprocal %127 {approx = true} : vector<8x1xf32> -> vector<8x1xf32>
    %129 = vector.broadcast %128 : vector<8x1xf32> to vector<8x8xf32>
    %130 = arith.mulf %125, %129 : vector<8x8xf32>
    %cst_44 = arith.constant dense<0.000000e+00> : vector<8x8xf32>
    %131 = tpu.matmul %130, %119, %cst_44 {dimension_numbers = #tpu.dot_dimension_numbers<[1], [0], [0], [1], [0, 0, 1, 1], [], []>} : vector<8x8xf32>, vector<8x8xf32>, vector<8x8xf32> -> vector<8x8xf32>
    %132 = vector.extract_strided_slice %12 {offsets = [8, 0], sizes = [8, 32], strides = [1, 1]} : vector<32x32xf32> to vector<8x32xf32>
    %cst_45 = arith.constant dense<0.000000e+00> : vector<8x32xf32>
    %133 = tpu.matmul %131, %132, %cst_45 {dimension_numbers = #tpu.dot_dimension_numbers<[1], [0], [0], [1], [0, 0, 1, 1], [], []>} : vector<8x8xf32>, vector<8x32xf32>, vector<8x32xf32> -> vector<8x32xf32>
    %134 = arith.addf %116, %133 : vector<8x32xf32>
    %135 = vector.extract_strided_slice %95 {offsets = [0, 16], sizes = [8, 8], strides = [1, 1]} : vector<8x32xf32> to vector<8x8xf32>
    %136 = vector.extract_strided_slice %96 {offsets = [0, 16], sizes = [8, 8], strides = [1, 1]} : vector<8x32xf32> to vector<8x8xf32>
    %137 = vector.extract_strided_slice %97 {offsets = [0, 16], sizes = [8, 8], strides = [1, 1]} : vector<8x32xf32> to vector<8x8xf32>
    %cst_46 = arith.constant dense<0.000000e+00> : vector<8x8xf32>
    %138 = tpu.matmul %135, %136, %cst_46 {dimension_numbers = #tpu.dot_dimension_numbers<[1], [1], [0], [0], [0, 0, 1, 0], [], []>} : vector<8x8xf32>, vector<8x8xf32>, vector<8x8xf32> -> vector<8x8xf32>
    %cst_47 = arith.constant dense<0xFF800000> : vector<8xf32>
    %139 = vector.multi_reduction <maximumf>, %138, %cst_47 [1] : vector<8x8xf32> to vector<8xf32>
    %140 = vector.shape_cast %139 : vector<8xf32> to vector<8x1xf32>
    %141 = vector.broadcast %140 : vector<8x1xf32> to vector<8x8xf32>
    %142 = arith.subf %138, %141 : vector<8x8xf32>
    %143 = math.exp %142 : vector<8x8xf32>
    %cst_48 = arith.constant dense<0.000000e+00> : vector<8xf32>
    %144 = vector.multi_reduction <add>, %143, %cst_48 [1] : vector<8x8xf32> to vector<8xf32>
    %145 = vector.shape_cast %144 : vector<8xf32> to vector<8x1xf32>
    %146 = tpu.reciprocal %145 {approx = true} : vector<8x1xf32> -> vector<8x1xf32>
    %147 = vector.broadcast %146 : vector<8x1xf32> to vector<8x8xf32>
    %148 = arith.mulf %143, %147 : vector<8x8xf32>
    %cst_49 = arith.constant dense<0.000000e+00> : vector<8x8xf32>
    %149 = tpu.matmul %148, %137, %cst_49 {dimension_numbers = #tpu.dot_dimension_numbers<[1], [0], [0], [1], [0, 0, 1, 1], [], []>} : vector<8x8xf32>, vector<8x8xf32>, vector<8x8xf32> -> vector<8x8xf32>
    %150 = vector.extract_strided_slice %12 {offsets = [16, 0], sizes = [8, 32], strides = [1, 1]} : vector<32x32xf32> to vector<8x32xf32>
    %cst_50 = arith.constant dense<0.000000e+00> : vector<8x32xf32>
    %151 = tpu.matmul %149, %150, %cst_50 {dimension_numbers = #tpu.dot_dimension_numbers<[1], [0], [0], [1], [0, 0, 1, 1], [], []>} : vector<8x8xf32>, vector<8x32xf32>, vector<8x32xf32> -> vector<8x32xf32>
    %152 = arith.addf %134, %151 : vector<8x32xf32>
    %153 = vector.extract_strided_slice %95 {offsets = [0, 24], sizes = [8, 8], strides = [1, 1]} : vector<8x32xf32> to vector<8x8xf32>
    %154 = vector.extract_strided_slice %96 {offsets = [0, 24], sizes = [8, 8], strides = [1, 1]} : vector<8x32xf32> to vector<8x8xf32>
    %155 = vector.extract_strided_slice %97 {offsets = [0, 24], sizes = [8, 8], strides = [1, 1]} : vector<8x32xf32> to vector<8x8xf32>
    %cst_51 = arith.constant dense<0.000000e+00> : vector<8x8xf32>
    %156 = tpu.matmul %153, %154, %cst_51 {dimension_numbers = #tpu.dot_dimension_numbers<[1], [1], [0], [0], [0, 0, 1, 0], [], []>} : vector<8x8xf32>, vector<8x8xf32>, vector<8x8xf32> -> vector<8x8xf32>
    %cst_52 = arith.constant dense<0xFF800000> : vector<8xf32>
    %157 = vector.multi_reduction <maximumf>, %156, %cst_52 [1] : vector<8x8xf32> to vector<8xf32>
    %158 = vector.shape_cast %157 : vector<8xf32> to vector<8x1xf32>
    %159 = vector.broadcast %158 : vector<8x1xf32> to vector<8x8xf32>
    %160 = arith.subf %156, %159 : vector<8x8xf32>
    %161 = math.exp %160 : vector<8x8xf32>
    %cst_53 = arith.constant dense<0.000000e+00> : vector<8xf32>
    %162 = vector.multi_reduction <add>, %161, %cst_53 [1] : vector<8x8xf32> to vector<8xf32>
    %163 = vector.shape_cast %162 : vector<8xf32> to vector<8x1xf32>
    %164 = tpu.reciprocal %163 {approx = true} : vector<8x1xf32> -> vector<8x1xf32>
    %165 = vector.broadcast %164 : vector<8x1xf32> to vector<8x8xf32>
    %166 = arith.mulf %161, %165 : vector<8x8xf32>
    %cst_54 = arith.constant dense<0.000000e+00> : vector<8x8xf32>
    %167 = tpu.matmul %166, %155, %cst_54 {dimension_numbers = #tpu.dot_dimension_numbers<[1], [0], [0], [1], [0, 0, 1, 1], [], []>} : vector<8x8xf32>, vector<8x8xf32>, vector<8x8xf32> -> vector<8x8xf32>
    %168 = vector.extract_strided_slice %12 {offsets = [24, 0], sizes = [8, 32], strides = [1, 1]} : vector<32x32xf32> to vector<8x32xf32>
    %cst_55 = arith.constant dense<0.000000e+00> : vector<8x32xf32>
    %169 = tpu.matmul %167, %168, %cst_55 {dimension_numbers = #tpu.dot_dimension_numbers<[1], [0], [0], [1], [0, 0, 1, 1], [], []>} : vector<8x8xf32>, vector<8x32xf32>, vector<8x32xf32> -> vector<8x32xf32>
    %170 = arith.addf %152, %169 : vector<8x32xf32>
    %171 = vector.broadcast %13 : vector<1x32xf32> to vector<8x32xf32>
    %172 = arith.addf %170, %171 : vector<8x32xf32>
    %c1 = arith.constant 1 : index
    %c0_56 = arith.constant 0 : index
    %c0_57 = arith.constant 0 : index
    %173 = vector.load %arg6[%c1, %c0_56, %c0_57] : memref<2x8x32xf32, #tpu.memory_space<vmem>>, vector<1x8x32xf32>
    %174 = vector.shape_cast %173 : vector<1x8x32xf32> to vector<8x32xf32>
    %175 = vector.shape_cast %172 : vector<8x32xf32> to vector<1x8x32xf32>
    tpu.vector_store %arg6[%c1, %c0_56, %c0_57], %175 {strides = array<i32>} : memref<2x8x32xf32, #tpu.memory_space<vmem>>, vector<1x8x32xf32>,
    return
  }
  func.func @transform_0(%arg0: i32) -> (i32, i32, i32) {
    %c0_i32 = arith.constant 0 : i32
    %c0_i32_0 = arith.constant 0 : i32
    %c0_i32_1 = arith.constant 0 : i32
    return %arg0, %c0_i32, %c0_i32_0 : i32, i32, i32
  }
  func.func @transform_1(%arg0: i32) -> (i32, i32) {
    %c0_i32 = arith.constant 0 : i32
    %c0_i32_0 = arith.constant 0 : i32
    %c0_i32_1 = arith.constant 0 : i32
    return %c0_i32, %c0_i32_0 : i32, i32
  }
  func.func @transform_2(%arg0: i32) -> (i32, i32) {
    %c0_i32 = arith.constant 0 : i32
    %c0_i32_0 = arith.constant 0 : i32
    %c0_i32_1 = arith.constant 0 : i32
    return %c0_i32, %c0_i32_0 : i32, i32
  }
  func.func @transform_3(%arg0: i32) -> (i32, i32) {
    %c0_i32 = arith.constant 0 : i32
    %c0_i32_0 = arith.constant 0 : i32
    %c0_i32_1 = arith.constant 0 : i32
    return %c0_i32, %c0_i32_0 : i32, i32
  }
  func.func @transform_4(%arg0: i32) -> (i32, i32) {
    %c0_i32 = arith.constant 0 : i32
    %c0_i32_0 = arith.constant 0 : i32
    %c0_i32_1 = arith.constant 0 : i32
    return %c0_i32, %c0_i32_0 : i32, i32
  }
  func.func @transform_5(%arg0: i32) -> (i32, i32, i32) {
    %c0_i32 = arith.constant 0 : i32
    %c0_i32_0 = arith.constant 0 : i32
    %c0_i32_1 = arith.constant 0 : i32
    return %arg0, %c0_i32, %c0_i32_0 : i32, i32, i32
  }
}

</mosaic_0001>

<bundles_post_ra>
// kernel: tpu_custom_call.1
= control target key start
LH: loop header
LB: loop body
LE: loop exit
PB: predicated region body
PF: predicated region fallthrough
CT: control target
= control target key end

     0   :  { %10 = vsyncpa [#allocation3], 0  ;;  %s2798_s0 = inlined_call_operand.hbm [shape: f32[2,8,32], index: 0, kind: input, shape index: {}]   ;;  %s2799_s1 = inlined_call_operand.hbm [shape: f32[32,96], index: 1, kind: input, shape index: {}]   ;;  %s2800_s2 = inlined_call_operand.vmem [shape: f32[1,96], index: 2, kind: input, shape index: {}]   ;;  %s2801_s3 = inlined_call_operand.hbm [shape: f32[32,32], index: 3, kind: input, shape index: {}]   ;;  %s2802_s4 = inlined_call_operand.vmem [shape: f32[1,32], index: 4, kind: input, shape index: {}]   ;;  %s2803_s5 = inlined_call_operand.hbm [shape: f32[2,8,32], index: 5, kind: output, shape index: {}]  }
   0x1   :  { %11 = vsyncpa [#allocation6], 0 }
   0x2   :  { %12 = vsyncpa [#allocation4], 0  ;;  %s2476_s18 = smov [#allocation5]   ;;  %s2477_s20 = smov [#allocation2]  }
   0x3   :  { %s30_s19 = sshll.u32 %s2476_s18, 4  ;;  %s18_s21 = sshll.u32 %s2477_s20, 4  ;;  %s31_s19 = int_to_ptr.vmem [resolvable:$true] %s30_s19  ;;  %s2525_s21 = int_to_ptr.vmem [resolvable:$true] %s18_s21 }
   0x4   :  { %s2382_s24 = scalar_lea.hbm %s2799_s1, 512 }
   0x5   :  { %p2383_p0 = scmp.ne.s32.totalorder %s2799_s1, %s2382_s24  ;;  %p2386_p1 = scmp.lt.u32.totalorder %s2382_s24, %s2799_s1 }
   0x7   :  { %p2388_p2 = pnand %p2386_p1, %p2383_p0 }
   0x9   :  { %2391 = shalt.err (!%p2388_p2)
}
   0xa   :  { %s2392_s29 = scalar_lea.vmem %s31_s19, 512  ;;  %p2397_p4 = scmp.lt.s32.totalorder %s31_s19, %s31_s19 }
   0xb   :  { %p2393_p3 = scmp.ne.s32.totalorder %s31_s19, %s2392_s29  ;;  %p2398_p5 = scmp.lt.s32.totalorder %s2392_s29, %s2392_s29 }
   0xd   :  { %p2399_p6 = por %p2398_p5, %p2397_p4 }
   0xf   :  { %p2400_p7 = pnand %p2399_p6, %p2393_p3 }
  0x11   :  { %2403 = shalt.err (!%p2400_p7)
}
  0x12   :  { %s2478_s30 = smov 128   ;;  %s2479_s6 = smov 8  }
  0x13   :  { %36 = dma.hbm_to_vmem [thread:$0]  %s2799_s1, 512, %s31_s19, [#allocation6], %s2478_s30, %s2478_s30, %s2479_s6  }
  0x14   :  { %s2404_s11 = scalar_lea.hbm %s2798_s0, 256 }
  0x15   :  { %p2405_p8 = scmp.ne.s32.totalorder %s2798_s0, %s2404_s11  ;;  %p2408_p9 = scmp.lt.u32.totalorder %s2404_s11, %s2798_s0 }
  0x17   :  { %p2410_p10 = pnand %p2408_p9, %p2405_p8 }
  0x19   :  { %2413 = shalt.err (!%p2410_p10)
}
  0x1a   :  { %s2414_s16 = scalar_lea.vmem %s2525_s21, 256  ;;  %p2419_p12 = scmp.lt.s32.totalorder %s2525_s21, %s2525_s21 }
  0x1b   :  { %p2415_p11 = scmp.ne.s32.totalorder %s2525_s21, %s2414_s16  ;;  %p2420_p13 = scmp.lt.s32.totalorder %s2414_s16, %s2414_s16 }
  0x1d   :  { %p2421_p0 = por %p2420_p13, %p2419_p12 }
  0x1f   :  { %p2422_p1 = pnand %p2421_p0, %p2415_p11 }
  0x21   :  { %2425 = shalt.err (!%p2422_p1)
}
  0x22   :  { %24 = dma.hbm_to_vmem [thread:$0]  %s2798_s0, 256, %s2525_s21, [#allocation3], %s2478_s30, %s2478_s30, %s2479_s6  }
  0x23   :  { %s2480_s18 = smov [#allocation7]   ;;  %s2426_s23 = scalar_lea.hbm %s2801_s3, 512 }
  0x24   :  { %s44_s19 = sshll.u32 %s2480_s18, 4  ;;  %p2427_p2 = scmp.ne.s32.totalorder %s2801_s3, %s2426_s23  ;;  %s45_s19 = int_to_ptr.vmem [resolvable:$true] %s44_s19 }
  0x25   :  { %p2430_p3 = scmp.lt.u32.totalorder %s2426_s23, %s2801_s3 }
  0x27   :  { %p2432_p4 = pnand %p2430_p3, %p2427_p2 }
  0x29   :  { %2435 = shalt.err (!%p2432_p4)
}
  0x2a   :  { %s2436_s28 = scalar_lea.vmem %s45_s19, 512  ;;  %p2441_p6 = scmp.lt.s32.totalorder %s45_s19, %s45_s19 }
  0x2b   :  { %p2437_p5 = scmp.ne.s32.totalorder %s45_s19, %s2436_s28  ;;  %p2442_p7 = scmp.lt.s32.totalorder %s2436_s28, %s2436_s28 }
  0x2d   :  { %p2443_p8 = por %p2442_p7, %p2441_p6 }
  0x2f   :  { %p2444_p9 = pnand %p2443_p8, %p2437_p5 }
  0x31   :  { %2447 = shalt.err (!%p2444_p9)
}
  0x32   :  { %50 = dma.hbm_to_vmem [thread:$0]  %s2801_s3, 512, %s45_s19, [#allocation6], %s2478_s30, %s2478_s30, %s2479_s6  }
  0x33   :  { %2470 = dma.done.wait [#allocation3], 256  }
  0x34   :  { %2471 = vsyncadd [#allocation3], 4294967040 }
  0x35   :  { %2472 = dma.done.wait [#allocation6], 1024  }
  0x36   :  { %2473 = vsyncadd [#allocation6], 4294966272  ;;  %vm75_vm0 = vcmask 261120   ;;  %v64_v0 = vld [vmem:[#allocation5] sm:$0xff]  ;;  %v65_v1 = vld [vmem:[#allocation5 + $0x8] sm:$0xff]  ;;  %v2481_v8 = vmov 0.0  }
  0x37   :  { %v66_v2 = vld [vmem:[#allocation5 + $0x10] sm:$0xff]  ;;  %v2323_v3 = vpack.c.bf16 %v65_v1, %v64_v0  ;;  %v67_v4 = vld [vmem:[#allocation5 + $0x18] sm:$0xff]  ;;  %2203 = vmatprep.subr.mxu1 %v2481_v8  ;;  %vm2482_vm1 = vmmov 0   ;;  %s2483_s7 = smov 96   ;;  %s2484_s8 = smov 120   ;;  %vm167_vm2 = vcmask 64512  }
  0x38   :  { %v62_v5 = vld [vmem:[#allocation2] sm:$0xff]  ;;  %v2327_v6 = vpack.c.bf16 %v67_v4, %v66_v2  ;;  %v63_v7 = vld [vmem:[#allocation2 + $0x8] sm:$0xff]  ;;  %2205 = vmatprep.mubr.msk.f32.mxu1 %vm2482_vm1, %v2481_v8  ;;  %s2485_s9 = smov 88   ;;  %s2487_s10 = smov 64   ;;  %v2624_v34 = vld [vmem:[#allocation7 + $0x8] sm:$0xff] }
  0x39   :  { %2200 = vmatprep.mubr.msk.f32.mxu0 %vm75_vm0, %v62_v5  ;;  %2324 = vmatprep.subr.bf16.mxu0 %v2323_v3  ;;  %v2102_v9 = vld [vmem:[%s2800_s2] ss:$0 sm:$0xff]  ;;  %s2486_s2 = smov 56   ;;  %s2488_s11 = smov 80   ;;  %v2636_v43 = vld [vmem:[#allocation7] sm:$0xff] }
  0x3a   :  { %2326 = vmatpush3.bf16.msra.mxu0 %v2323_v3  ;;  %s2489_s12 = smov 112   ;;  %s2490_s13 = smov 72   ;;  %v2670_v5 = vld [vmem:[#allocation7 + $0x10] sm:$0xff] }
  0x3b   :  { %2328 = vmatprep.subr.bf16.mxu0 %v2327_v6  ;;  %s2491_s14 = smov 104   ;;  %s2492_s15 = smov 48  }
  0x3c   :  { %s2493_s16 = smov 40  }
  0x3e   :  { %2330 = vmatpush3.bf16.msra.mxu0 %v2327_v6 }
  0x3f   :  { %2213 = vmatprep.subr.mxu0 %v2481_v8 }
  0x41   :  { %2201 = vmatmul.mubr.msk.f32.vlgmr.msra.gmra.mrb[0].mxu0 %vm75_vm0, %v63_v7 }
  0x42   :  { %2215 = vmatprep.mubr.msk.f32.mxu0 %vm2482_vm1, %v2481_v8 }
 0x114   :  { %v2202_v10 = vpop.f32.mrb[0].mxu0 }
 0x115   :  { %v2588_v11 = vadd.f32 %v2202_v10, %v2102_v9  ;;  %v148_v12 = vpop.f32.mrb[1].mxu0 }
 0x116   :  { %v2590_v13 = vadd.f32 %v2102_v9, %v148_v12 }
 0x118   :  { %165 = vrot.lane.b32.xlu0 %v2590_v13, %s2483_s7  ;;  %v2595_v14 = vmul.f32 0.35355338, %v2590_v13 }
 0x11a   :  { %330 = vrot.lane.b32.xlu1 %v2595_v14, %s2484_s8 }
 0x11c   :  { %332 = vrot.lane.b32.xlu0 %v2590_v13, %s2485_s9 }
 0x18a   :  { %v166_v15 = vpop.permute.xlu0 %165 }
 0x18b   :  { %2204 = vmatpush3.xpose.msk.msra.mxu1 %vm167_vm2, %v166_v15 }
 0x18c   :  { %2208 = vmatprep.subr.mxu1 %v2481_v8  ;;  %v331_v17 = vpop.permute.xlu1 %330 }
 0x18e   :  { %v333_v16 = vpop.permute.xlu0 %332  ;;  %2206 = vmatmul.mubr.msk.f32.vlgmr.msra.gmra.mrb[0].mxu1 %vm167_vm2, %v2595_v14 }
 0x18f   :  { %2214 = vmatpush3.xpose.msk.msra.mxu0 %vm167_vm2, %v333_v16  ;;  %2210 = vmatprep.mubr.msk.f32.mxu1 %vm2482_vm1, %v2481_v8 }
 0x190   :  { %2223 = vmatprep.subr.mxu0 %v2481_v8 }
 0x192   :  { %2216 = vmatmul.mubr.msk.f32.vlgmr.msra.gmra.mrb[2].mxu0 %vm167_vm2, %v331_v17 }
 0x193   :  { %2225 = vmatprep.mubr.msk.f32.mxu0 %vm2482_vm1, %v2481_v8  ;;  %2224 = vmatpush3.msra.mxu0 %v2624_v34 }
 0x194   :  { %2233 = vmatprep.subr.mxu0 %v2481_v8 }
 0x261   :  { %v239_v18 = vpop.f32.mrb[0].mxu1 }
 0x262   :  { %v2207_v19 = vpop.f32.mrb[1].mxu1  ;;  %v243_v20 = vsel %vm167_vm2, %v239_v18, -inf }
 0x263   :  { %244 = vmax.xlane.f32.xlu1 %v243_v20  ;;  %v2685_v20 = vmul.f32 0.35355338, %v2588_v11 }
 0x265   :  { %v404_v21 = vpop.f32.mrb[2].mxu0 }
 0x266   :  { %v2217_v22 = vpop.f32.mrb[3].mxu0  ;;  %v408_v23 = vsel %vm167_vm2, %v404_v21, -inf }
 0x267   :  { %409 = vmax.xlane.f32.xlu0 %v408_v23 }
 0x2f0   :  { %v245_v24 = vpop.xlane.xlu1 %244 }
 0x2f1   :  { %v246_v25 = vsub.f32 %v239_v18, %v245_v24 }
 0x2f3   :  { %v247_v26 = vmul.f32 1.442695, %v246_v25 }
 0x2f4   :  { %v410_v27 = vpop.xlane.xlu0 %409 }
 0x2f5   :  { %2350 = vpow2.f32 %v247_v26  ;;  %v411_v28 = vsub.f32 %v404_v21, %v410_v27 }
 0x2f7   :  { %v412_v29 = vmul.f32 1.442695, %v411_v28 }
 0x2f9   :  { %2352 = vpow2.f32 %v412_v29  ;;  %v2705_v29 = vld [vmem:[#allocation7 + $0x18] sm:$0xff] }
 0x2ff   :  { %v2351_v30 = vpop.eup %2350 }
 0x300   :  { %v249_v31 = vsel %vm167_vm2, %v2351_v30, 0.0 }
 0x301   :  { %250 = vadd.xlane.f32.xlu0 %v249_v31 }
 0x303   :  { %v2353_v32 = vpop.eup %2352 }
 0x304   :  { %v414_v33 = vsel %vm167_vm2, %v2353_v32, 0.0 }
 0x305   :  { %415 = vadd.xlane.f32.xlu1 %v414_v33 }
 0x316   :  { %419 = vrot.lane.b32.xlu1 %v2590_v13, %s2486_s2 }
 0x317   :  { %254 = vrot.lane.b32.xlu0 %v2590_v13, %s2487_s10 }
 0x31a   :  { %643 = vrot.lane.b32.xlu1 %v2590_v13, %s2488_s11 }
 0x31b   :  { %641 = vrot.lane.b32.xlu0 %v2595_v14, %s2489_s12 }
 0x38e   :  { %v251_v35 = vpop.xlane.xlu0 %250 }
 0x38f   :  { %2354 = vrcp.f32 %v251_v35 }
 0x392   :  { %v255_v36 = vpop.permute.xlu0 %254  ;;  %v416_v37 = vpop.xlane.xlu1 %415 }
 0x393   :  { %2356 = vrcp.f32 %v416_v37  ;;  %2209 = vmatpush3.msra.mxu1 %v255_v36 }
 0x394   :  { %2218 = vmatprep.subr.mxu1 %v2481_v8 }
 0x396   :  { %v420_v40 = vpop.permute.xlu1 %419  ;;  %v642_v49 = vpop.permute.xlu0 %641 }
 0x399   :  { %v2355_v38 = vpop.eup %2354 }
 0x39a   :  { %v253_v39 = vmul.f32 %v2355_v38, %v2351_v30  ;;  %v644_v47 = vpop.permute.xlu1 %643 }
 0x39c   :  { %2211 = vmatmul.mubr.msk.f32.vlgmr.msra.gmra.mrb[2].mxu1 %vm167_vm2, %v253_v39 }
 0x39d   :  { %v2357_v41 = vpop.eup %2356  ;;  %2219 = vmatpush3.msra.mxu1 %v420_v40  ;;  %2220 = vmatprep.mubr.msk.f32.mxu1 %vm2482_vm1, %v2481_v8 }
 0x39e   :  { %v418_v42 = vmul.f32 %v2357_v41, %v2353_v32  ;;  %2228 = vmatprep.subr.mxu1 %v2481_v8 }
 0x3a0   :  { %2221 = vmatmul.mubr.msk.f32.vlgmr.msra.gmra.mrb[4].mxu1 %vm167_vm2, %v418_v42 }
 0x3a1   :  { %2230 = vmatprep.mubr.msk.f32.mxu1 %vm2482_vm1, %v2481_v8  ;;  %2229 = vmatpush3.msra.mxu1 %v2636_v43 }
 0x3a2   :  { %2238 = vmatprep.subr.mxu1 %v2481_v8 }
 0x46f   :  { %v326_v44 = vpop.f32.mrb[2].mxu1 }
 0x470   :  { %v2212_v45 = vpop.f32.mrb[3].mxu1  ;;  %2231 = vmatmul.mubr.msk.f32.vlgmr.msra.gmra.mrb[6].mxu1 %vm167_vm2, %v326_v44 }
 0x471   :  { %2240 = vmatprep.mubr.msk.f32.mxu1 %vm2482_vm1, %v2481_v8 }
 0x473   :  { %v491_v46 = vpop.f32.mrb[4].mxu1 }
 0x474   :  { %v2222_v48 = vpop.f32.mrb[5].mxu1  ;;  %2226 = vmatmul.mubr.msk.f32.vlgmr.msra.gmra.mrb[4].mxu0 %vm167_vm2, %v491_v46 }
 0x475   :  { %2234 = vmatpush3.xpose.msk.msra.mxu0 %vm167_vm2, %v644_v47  ;;  %2235 = vmatprep.mubr.msk.f32.mxu0 %vm2482_vm1, %v2481_v8 }
 0x476   :  { %2243 = vmatprep.subr.mxu0 %v2481_v8 }
 0x478   :  { %2236 = vmatmul.mubr.msk.f32.vlgmr.msra.gmra.mrb[6].mxu0 %vm167_vm2, %v642_v49 }
 0x479   :  { %2245 = vmatprep.mubr.msk.f32.mxu0 %vm2482_vm1, %v2481_v8  ;;  %2244 = vmatpush3.msra.mxu0 %v2670_v5 }
 0x47a   :  { %2253 = vmatprep.subr.mxu0 %v2481_v8 }
 0x543   :  { %v637_v50 = vpop.f32.mrb[6].mxu1 }
 0x544   :  { %v2232_v51 = vpop.f32.mrb[7].mxu1 }
 0x547   :  { %v564_v52 = vpop.f32.mrb[4].mxu0 }
 0x548   :  { %v638_v53 = vadd.f32 %v637_v50, %v564_v52  ;;  %v2227_v54 = vpop.f32.mrb[5].mxu0  ;;  %v2728_v50 = vld [vmem:[%s2802_s4] ss:$0 sm:$0xff]  ;;  %s2494_s4 = smov [#allocation8]  }
 0x549   :  { %s2089_s18 = sshll.u32 %s2494_s4, 4  ;;  %s2090_s18 = int_to_ptr.vmem [resolvable:$true] %s2089_s18 }
 0x54a   :  { %s2448_s19 = scalar_lea.vmem %s2090_s18, 256  ;;  %p2453_p11 = scmp.lt.s32.totalorder %s2090_s18, %s2090_s18 }
 0x54b   :  { %v715_v55 = vpop.f32.mrb[6].mxu0  ;;  %p2449_p10 = scmp.ne.s32.totalorder %s2090_s18, %s2448_s19  ;;  %p2454_p12 = scmp.lt.s32.totalorder %s2448_s19, %s2448_s19 }
 0x54c   :  { %v2237_v56 = vpop.f32.mrb[7].mxu0  ;;  %v719_v57 = vsel %vm167_vm2, %v715_v55, -inf }
 0x54d   :  { %720 = vmax.xlane.f32.xlu1 %v719_v57  ;;  %p2455_p13 = por %p2454_p12, %p2453_p11 }
 0x54f   :  { %p2456_p0 = pnand %p2455_p13, %p2449_p10 }
 0x55e   :  { %882 = vrot.lane.b32.xlu1 %v2590_v13, %s2490_s13 }
 0x562   :  { %880 = vrot.lane.b32.xlu1 %v2595_v14, %s2491_s14 }
 0x566   :  { %1128 = vrot.lane.b32.xlu1 %v2588_v11, %s2483_s7 }
 0x5da   :  { %v721_v58 = vpop.xlane.xlu1 %720 }
 0x5db   :  { %v722_v59 = vsub.f32 %v715_v55, %v721_v58 }
 0x5dd   :  { %v723_v60 = vmul.f32 1.442695, %v722_v59 }
 0x5de   :  { %v883_v2 = vpop.permute.xlu1 %882 }
 0x5df   :  { %2358 = vpow2.f32 %v723_v60 }
 0x5e2   :  { %v881_v4 = vpop.permute.xlu1 %880 }
 0x5e6   :  { %v1129_v23 = vpop.permute.xlu1 %1128 }
 0x5e9   :  { %v2359_v61 = vpop.eup %2358 }
 0x5ea   :  { %v725_v62 = vsel %vm167_vm2, %v2359_v61, 0.0 }
 0x5eb   :  { %726 = vadd.xlane.f32.xlu0 %v725_v62 }
 0x601   :  { %730 = vrot.lane.b32.xlu0 %v2590_v13, %s2492_s15 }
 0x678   :  { %v727_v63 = vpop.xlane.xlu0 %726 }
 0x679   :  { %2360 = vrcp.f32 %v727_v63 }
 0x67c   :  { %v731_v0 = vpop.permute.xlu0 %730 }
 0x67d   :  { %2239 = vmatpush3.msra.mxu1 %v731_v0 }
 0x67e   :  { %2248 = vmatprep.subr.mxu1 %v2481_v8 }
 0x683   :  { %v2361_v1 = vpop.eup %2360 }
 0x684   :  { %v729_v3 = vmul.f32 %v2361_v1, %v2359_v61 }
 0x686   :  { %2241 = vmatmul.mubr.msk.f32.vlgmr.msra.gmra.mrb[8].mxu1 %vm167_vm2, %v729_v3 }
 0x687   :  { %2249 = vmatpush3.xpose.msk.msra.mxu1 %vm167_vm2, %v883_v2  ;;  %2250 = vmatprep.mubr.msk.f32.mxu1 %vm2482_vm1, %v2481_v8 }
 0x688   :  { %2258 = vmatprep.subr.mxu1 %v2481_v8 }
 0x68a   :  { %2251 = vmatmul.mubr.msk.f32.vlgmr.msra.gmra.mrb[10].mxu1 %vm167_vm2, %v881_v4 }
 0x68b   :  { %2260 = vmatprep.mubr.msk.f32.mxu1 %vm2482_vm1, %v2481_v8  ;;  %2259 = vmatpush3.msra.mxu1 %v2705_v29 }
 0x68c   :  { %2268 = vmatprep.subr.mxu1 %v2481_v8 }
 0x759   :  { %v802_v6 = vpop.f32.mrb[8].mxu1 }
 0x75a   :  { %v2242_v7 = vpop.f32.mrb[9].mxu1  ;;  %2246 = vmatmul.mubr.msk.f32.vlgmr.msra.gmra.mrb[8].mxu0 %vm167_vm2, %v802_v6 }
 0x75b   :  { %2255 = vmatprep.mubr.msk.f32.mxu0 %vm2482_vm1, %v2481_v8 }
 0x75d   :  { %v954_v9 = vpop.f32.mrb[10].mxu1 }
 0x75e   :  { %v2252_v10 = vpop.f32.mrb[11].mxu1  ;;  %v958_v12 = vsel %vm167_vm2, %v954_v9, -inf }
 0x75f   :  { %959 = vmax.xlane.f32.xlu0 %v958_v12 }
 0x775   :  { %969 = vrot.lane.b32.xlu0 %v2590_v13, %s2493_s16 }
 0x779   :  { %1294 = vrot.lane.b32.xlu0 %v2588_v11, %s2485_s9 }
 0x7ec   :  { %v960_v14 = vpop.xlane.xlu0 %959 }
 0x7ed   :  { %v961_v15 = vsub.f32 %v954_v9, %v960_v14 }
 0x7ef   :  { %v962_v16 = vmul.f32 1.442695, %v961_v15 }
 0x7f0   :  { %v970_v17 = vpop.permute.xlu0 %969 }
 0x7f1   :  { %2362 = vpow2.f32 %v962_v16  ;;  %2254 = vmatpush3.msra.mxu0 %v970_v17 }
 0x7f2   :  { %2263 = vmatprep.subr.mxu0 %v2481_v8 }
 0x7f4   :  { %v1295_v27 = vpop.permute.xlu0 %1294 }
 0x7fb   :  { %v2363_v18 = vpop.eup %2362 }
 0x7fc   :  { %v964_v19 = vsel %vm167_vm2, %v2363_v18, 0.0 }
 0x7fd   :  { %965 = vadd.xlane.f32.xlu1 %v964_v19 }
 0x80e   :  { %1292 = vrot.lane.b32.xlu1 %v2685_v20, %s2484_s8 }
 0x82d   :  { %v875_v13 = vpop.f32.mrb[8].mxu0 }
 0x82e   :  { %v879_v21 = vadd.f32 %v875_v13, %v638_v53  ;;  %v2247_v22 = vpop.f32.mrb[9].mxu0 }
 0x88a   :  { %v966_v24 = vpop.xlane.xlu1 %965 }
 0x88b   :  { %2364 = vrcp.f32 %v966_v24 }
 0x88e   :  { %v1293_v28 = vpop.permute.xlu1 %1292 }
 0x895   :  { %v2365_v25 = vpop.eup %2364 }
 0x896   :  { %v968_v26 = vmul.f32 %v2365_v25, %v2363_v18 }
 0x898   :  { %2256 = vmatmul.mubr.msk.f32.vlgmr.msra.gmra.mrb[10].mxu0 %vm167_vm2, %v968_v26 }
 0x899   :  { %2264 = vmatpush3.xpose.msk.msra.mxu0 %vm167_vm2, %v1129_v23  ;;  %2265 = vmatprep.mubr.msk.f32.mxu0 %vm2482_vm1, %v2481_v8 }
 0x89a   :  { %2273 = vmatprep.subr.mxu0 %v2481_v8 }
 0x89c   :  { %2266 = vmatmul.mubr.msk.f32.vlgmr.msra.gmra.mrb[12].mxu0 %vm167_vm2, %v2685_v20 }
 0x89d   :  { %2274 = vmatpush3.xpose.msk.msra.mxu0 %vm167_vm2, %v1295_v27  ;;  %2275 = vmatprep.mubr.msk.f32.mxu0 %vm2482_vm1, %v2481_v8 }
 0x89e   :  { %2283 = vmatprep.subr.mxu0 %v2481_v8 }
 0x8a0   :  { %2276 = vmatmul.mubr.msk.f32.vlgmr.msra.gmra.mrb[14].mxu0 %vm167_vm2, %v1293_v28 }
 0x8a1   :  { %2284 = vmatpush3.msra.mxu0 %v2624_v34  ;;  %2285 = vmatprep.mubr.msk.f32.mxu0 %vm2482_vm1, %v2481_v8 }
 0x8a2   :  { %2293 = vmatprep.subr.mxu0 %v2481_v8 }
 0x96b   :  { %v1041_v30 = vpop.f32.mrb[10].mxu0 }
 0x96c   :  { %v2257_v31 = vpop.f32.mrb[11].mxu0  ;;  %2261 = vmatmul.mubr.msk.f32.vlgmr.msra.gmra.mrb[12].mxu1 %vm167_vm2, %v1041_v30 }
 0x96d   :  { %2270 = vmatprep.mubr.msk.f32.mxu1 %vm2482_vm1, %v2481_v8 }
 0x96f   :  { %v1201_v32 = vpop.f32.mrb[12].mxu0 }
 0x970   :  { %v2267_v33 = vpop.f32.mrb[13].mxu0  ;;  %v1205_v34 = vsel %vm167_vm2, %v1201_v32, -inf }
 0x971   :  { %1206 = vmax.xlane.f32.xlu0 %v1205_v34 }
 0x973   :  { %v1366_v35 = vpop.f32.mrb[14].mxu0 }
 0x974   :  { %v2277_v36 = vpop.f32.mrb[15].mxu0  ;;  %v1370_v37 = vsel %vm167_vm2, %v1366_v35, -inf }
 0x975   :  { %1371 = vmax.xlane.f32.xlu1 %v1370_v37 }
 0x986   :  { %1216 = vrot.lane.b32.xlu1 %v2588_v11, %s2487_s10 }
 0x98a   :  { %1605 = vrot.lane.b32.xlu1 %v2588_v11, %s2488_s11 }
 0x98e   :  { %1603 = vrot.lane.b32.xlu1 %v2685_v20, %s2489_s12 }
 0x9fe   :  { %v1207_v38 = vpop.xlane.xlu0 %1206 }
 0x9ff   :  { %v1208_v39 = vsub.f32 %v1201_v32, %v1207_v38 }
 0xa01   :  { %v1209_v40 = vmul.f32 1.442695, %v1208_v39 }
 0xa02   :  { %v1372_v41 = vpop.xlane.xlu1 %1371 }
 0xa03   :  { %2366 = vpow2.f32 %v1209_v40  ;;  %v1373_v42 = vsub.f32 %v1366_v35, %v1372_v41 }
 0xa05   :  { %v1374_v44 = vmul.f32 1.442695, %v1373_v42 }
 0xa06   :  { %v1217_v45 = vpop.permute.xlu1 %1216 }
 0xa07   :  { %2368 = vpow2.f32 %v1374_v44  ;;  %2269 = vmatpush3.msra.mxu1 %v1217_v45 }
 0xa08   :  { %2278 = vmatprep.subr.mxu1 %v2481_v8 }
 0xa0a   :  { %v1606_v0 = vpop.permute.xlu1 %1605 }
 0xa0d   :  { %v2367_v46 = vpop.eup %2366 }
 0xa0e   :  { %v1211_v47 = vsel %vm167_vm2, %v2367_v46, 0.0 }
 0xa0f   :  { %1212 = vadd.xlane.f32.xlu0 %v1211_v47 }
 0xa11   :  { %v2369_v48 = vpop.eup %2368 }
 0xa12   :  { %v1376_v49 = vsel %vm167_vm2, %v2369_v48, 0.0 }
 0xa13   :  { %1377 = vadd.xlane.f32.xlu0 %v1376_v49 }
 0xa29   :  { %1381 = vrot.lane.b32.xlu0 %v2588_v11, %s2486_s2 }
 0xa3f   :  { %v1114_v51 = vpop.f32.mrb[12].mxu1 }
 0xa40   :  { %v1118_v52 = vadd.f32 %v1114_v51, %v879_v21  ;;  %v2262_v53 = vpop.f32.mrb[13].mxu1 }
 0xa42   :  { %v1125_v54 = vadd.f32 %v2728_v50, %v1118_v52 }
 0xa44   :  { %1126 = vst.msk [vmem:[#allocation8] sm:$0xff] %vm75_vm0, %v1125_v54 }
 0xa9c   :  { %v1213_v55 = vpop.xlane.xlu0 %1212 }
 0xa9d   :  { %2370 = vrcp.f32 %v1213_v55 }
 0xaa0   :  { %v1378_v56 = vpop.xlane.xlu0 %1377 }
 0xaa1   :  { %2372 = vrcp.f32 %v1378_v56 }
 0xaa4   :  { %v1382_v59 = vpop.permute.xlu0 %1381 }
 0xaa7   :  { %v2371_v57 = vpop.eup %2370 }
 0xaa8   :  { %v1215_v58 = vmul.f32 %v2371_v57, %v2367_v46 }
 0xaaa   :  { %2271 = vmatmul.mubr.msk.f32.vlgmr.msra.gmra.mrb[14].mxu1 %vm167_vm2, %v1215_v58 }
 0xaab   :  { %v2373_v60 = vpop.eup %2372  ;;  %2279 = vmatpush3.msra.mxu1 %v1382_v59  ;;  %2280 = vmatprep.mubr.msk.f32.mxu1 %vm2482_vm1, %v2481_v8 }
 0xaac   :  { %v1380_v61 = vmul.f32 %v2373_v60, %v2369_v48  ;;  %2288 = vmatprep.subr.mxu1 %v2481_v8 }
 0xaae   :  { %2281 = vmatmul.mubr.msk.f32.vlgmr.msra.gmra.mrb[16].mxu1 %vm167_vm2, %v1380_v61 }
 0xaaf   :  { %2289 = vmatpush3.msra.mxu1 %v2636_v43  ;;  %2290 = vmatprep.mubr.msk.f32.mxu1 %vm2482_vm1, %v2481_v8  ;;  %v1604_v43 = vpop.permute.xlu1 %1603 }
 0xab0   :  { %2298 = vmatprep.subr.mxu1 %v2481_v8 }
 0xb7d   :  { %v1288_v62 = vpop.f32.mrb[14].mxu1 }
 0xb7e   :  { %v2272_v63 = vpop.f32.mrb[15].mxu1  ;;  %2291 = vmatmul.mubr.msk.f32.vlgmr.msra.gmra.mrb[18].mxu1 %vm167_vm2, %v1288_v62 }
 0xb7f   :  { %2300 = vmatprep.mubr.msk.f32.mxu1 %vm2482_vm1, %v2481_v8 }
 0xb81   :  { %v1453_v1 = vpop.f32.mrb[16].mxu1 }
 0xb82   :  { %v2282_v2 = vpop.f32.mrb[17].mxu1  ;;  %2286 = vmatmul.mubr.msk.f32.vlgmr.msra.gmra.mrb[16].mxu0 %vm167_vm2, %v1453_v1 }
 0xb83   :  { %2294 = vmatpush3.xpose.msk.msra.mxu0 %vm167_vm2, %v1606_v0  ;;  %2295 = vmatprep.mubr.msk.f32.mxu0 %vm2482_vm1, %v2481_v8 }
 0xb84   :  { %2303 = vmatprep.subr.mxu0 %v2481_v8 }
 0xb86   :  { %2296 = vmatmul.mubr.msk.f32.vlgmr.msra.gmra.mrb[18].mxu0 %vm167_vm2, %v1604_v43 }
 0xb87   :  { %2304 = vmatpush3.msra.mxu0 %v2670_v5  ;;  %2305 = vmatprep.mubr.msk.f32.mxu0 %vm2482_vm1, %v2481_v8 }
 0xb88   :  { %2313 = vmatprep.subr.mxu0 %v2481_v8 }
 0xc51   :  { %v1599_v3 = vpop.f32.mrb[18].mxu1 }
 0xc52   :  { %v2292_v4 = vpop.f32.mrb[19].mxu1 }
 0xc55   :  { %v1526_v6 = vpop.f32.mrb[16].mxu0 }
 0xc56   :  { %v1600_v7 = vadd.f32 %v1599_v3, %v1526_v6  ;;  %v2287_v9 = vpop.f32.mrb[17].mxu0 }
 0xc59   :  { %v1677_v10 = vpop.f32.mrb[18].mxu0 }
 0xc5a   :  { %v2297_v12 = vpop.f32.mrb[19].mxu0  ;;  %v1681_v14 = vsel %vm167_vm2, %v1677_v10, -inf }
 0xc5b   :  { %1682 = vmax.xlane.f32.xlu0 %v1681_v14 }
 0xc71   :  { %1692 = vrot.lane.b32.xlu0 %v2588_v11, %s2492_s15 }
 0xc75   :  { %1842 = vrot.lane.b32.xlu0 %v2685_v20, %s2491_s14 }
 0xce8   :  { %v1683_v5 = vpop.xlane.xlu0 %1682 }
 0xce9   :  { %v1684_v15 = vsub.f32 %v1677_v10, %v1683_v5 }
 0xceb   :  { %v1685_v16 = vmul.f32 1.442695, %v1684_v15 }
 0xcec   :  { %v1693_v17 = vpop.permute.xlu0 %1692 }
 0xced   :  { %2374 = vpow2.f32 %v1685_v16  ;;  %2299 = vmatpush3.msra.mxu1 %v1693_v17 }
 0xcee   :  { %2308 = vmatprep.subr.mxu1 %v2481_v8 }
 0xcf0   :  { %v1843_v23 = vpop.permute.xlu0 %1842 }
 0xcf7   :  { %v2375_v18 = vpop.eup %2374 }
 0xcf8   :  { %v1687_v19 = vsel %vm167_vm2, %v2375_v18, 0.0 }
 0xcf9   :  { %1688 = vadd.xlane.f32.xlu1 %v1687_v19 }
 0xd0a   :  { %1844 = vrot.lane.b32.xlu1 %v2588_v11, %s2490_s13 }
 0xd86   :  { %v1689_v13 = vpop.xlane.xlu1 %1688 }
 0xd87   :  { %2376 = vrcp.f32 %v1689_v13 }
 0xd8a   :  { %v1845_v20 = vpop.permute.xlu1 %1844 }
 0xd91   :  { %v2377_v21 = vpop.eup %2376 }
 0xd92   :  { %v1691_v22 = vmul.f32 %v2377_v21, %v2375_v18 }
 0xd94   :  { %2301 = vmatmul.mubr.msk.f32.vlgmr.msra.gmra.mrb[20].mxu1 %vm167_vm2, %v1691_v22 }
 0xd95   :  { %2309 = vmatpush3.xpose.msk.msra.mxu1 %vm167_vm2, %v1845_v20  ;;  %2310 = vmatprep.mubr.msk.f32.mxu1 %vm2482_vm1, %v2481_v8 }
 0xd96   :  { %2318 = vmatprep.subr.mxu1 %v2481_v8 }
 0xd98   :  { %2311 = vmatmul.mubr.msk.f32.vlgmr.msra.gmra.mrb[22].mxu1 %vm167_vm2, %v1843_v23 }
 0xd99   :  { %2319 = vmatpush3.msra.mxu1 %v2705_v29  ;;  %2320 = vmatprep.mubr.msk.f32.mxu1 %vm2482_vm1, %v2481_v8 }
 0xe67   :  { %v1764_v24 = vpop.f32.mrb[20].mxu1 }
 0xe68   :  { %v2302_v25 = vpop.f32.mrb[21].mxu1  ;;  %2306 = vmatmul.mubr.msk.f32.vlgmr.msra.gmra.mrb[20].mxu0 %vm167_vm2, %v1764_v24 }
 0xe69   :  { %2315 = vmatprep.mubr.msk.f32.mxu0 %vm2482_vm1, %v2481_v8 }
 0xe6b   :  { %v1916_v26 = vpop.f32.mrb[22].mxu1 }
 0xe6c   :  { %v2312_v27 = vpop.f32.mrb[23].mxu1  ;;  %v1920_v28 = vsel %vm167_vm2, %v1916_v26, -inf }
 0xe6d   :  { %1921 = vmax.xlane.f32.xlu1 %v1920_v28 }
 0xefa   :  { %v1922_v30 = vpop.xlane.xlu1 %1921 }
 0xefb   :  { %v1923_v31 = vsub.f32 %v1916_v26, %v1922_v30 }
 0xefd   :  { %v1924_v32 = vmul.f32 1.442695, %v1923_v31 }
 0xeff   :  { %2378 = vpow2.f32 %v1924_v32 }
 0xf09   :  { %v2379_v29 = vpop.eup %2378 }
 0xf0a   :  { %v1926_v33 = vsel %vm167_vm2, %v2379_v29, 0.0 }
 0xf0b   :  { %1927 = vadd.xlane.f32.xlu0 %v1926_v33 }
 0xf21   :  { %1931 = vrot.lane.b32.xlu0 %v2588_v11, %s2493_s16 }
 0xf3b   :  { %v1837_v34 = vpop.f32.mrb[20].mxu0 }
 0xf3c   :  { %v1841_v35 = vadd.f32 %v1837_v34, %v1600_v7  ;;  %v2307_v36 = vpop.f32.mrb[21].mxu0 }
 0xf98   :  { %v1928_v8 = vpop.xlane.xlu0 %1927 }
 0xf99   :  { %2380 = vrcp.f32 %v1928_v8 }
 0xf9c   :  { %v1932_v37 = vpop.permute.xlu0 %1931 }
 0xf9d   :  { %2314 = vmatpush3.msra.mxu0 %v1932_v37 }
 0xfa3   :  { %v2381_v38 = vpop.eup %2380 }
 0xfa4   :  { %v1930_v39 = vmul.f32 %v2381_v38, %v2379_v29 }
 0xfa6   :  { %2316 = vmatmul.mubr.msk.f32.vlgmr.msra.gmra.mrb[22].mxu0 %vm167_vm2, %v1930_v39 }
0x1079   :  { %v2003_v40 = vpop.f32.mrb[22].mxu0 }
0x107a   :  { %v2317_v41 = vpop.f32.mrb[23].mxu0  ;;  %2321 = vmatmul.mubr.msk.f32.vlgmr.msra.gmra.mrb[24].mxu1 %vm167_vm2, %v2003_v40 }
0x114d   :  { %v2076_v42 = vpop.f32.mrb[24].mxu1 }
0x114e   :  { %v2080_v44 = vadd.f32 %v2076_v42, %v1841_v35  ;;  %v2322_v11 = vpop.f32.mrb[25].mxu1 }
0x1150   :  { %v2081_v45 = vadd.f32 %v2728_v50, %v2080_v44 }
0x1152   :  { %2083 = vst.msk [vmem:[#allocation8 + $0x8] sm:$0xff] %vm75_vm0, %v2081_v45 }
0x1153   :  { %2459 = shalt.err (!%p2456_p0)
}
0x1154   :  { %s2460_s23 = scalar_lea.hbm %s2803_s5, 256 }
0x1155   :  { %p2461_p1 = scmp.ne.s32.totalorder %s2803_s5, %s2460_s23  ;;  %p2464_p2 = scmp.lt.u32.totalorder %s2460_s23, %s2803_s5 }
0x1157   :  { %p2466_p3 = pnand %p2464_p2, %p2461_p1 }
0x1159   :  { %2469 = shalt.err (!%p2466_p3)
}
0x115a   :  { %2095 = dma.vmem_to_hbm [thread:$0]  %s2090_s18, 256, %s2803_s5, [#allocation4], %s2478_s30, %s2478_s30, %s2479_s6  }
0x115b   :  { %2474 = dma.done.wait [#allocation4], 256  }
0x115c   :  { %2475 = vsyncadd [#allocation4], 4294967040 }
0x115d   :  { %2099 = vsyncpa [#allocation3], 1 }
0x115e   :  { %2100 = vsyncpa [#allocation6], 1 }
0x115f   :  { %2101 = vsyncpa [#allocation4], 1 }

</bundles_post_ra>
